<compile_context>
chip_gen: v7x
topology: tpu7x:2x2x1
jax: 0.10.0
libtpu: 0.0.40
codegen_flags: <defaults>
</compile_context>

<pallas_src>
import jax
import jax.numpy as jnp
from jax.experimental import pallas as pl
from jax.experimental.pallas import tpu as pltpu

# ----- hyper-parameters implied by the module __init__ (small, synthetic) -----
N_FINGER_FEATURE = 64   # n_finger_feature
N_SEQ_FEATURE = 128     # n_seq_feature
N_HIDDEN = 32           # n_hidden
BATCH = 2

_LANE = 128
_OUT_PAD = max(_LANE, 2 * N_HIDDEN)   # packed output width (lane-dense, 128)
_MAX_TILE_B = 512                     # batch tile once B grows (VMEM-safe on v7x)


def _fused_embedding_kernel(xd_ref, xp_ref, w_ref, b_ref, o_ref):
    """Both (Linear -> ReLU) paths in one kernel.

    xd_ref: (tb, F_dr)            drug features
    xp_ref: (tb, F_p)             protein features
    w_ref:  (F_dr + F_p, 128)     block-diagonal packed weight:
                                    rows [0:F_dr]  -> W_dr.T in cols [0:H]
                                    rows [F_dr: ]  -> W_p.T  in cols [H:2H]
                                    cols [2H:128]  -> zero padding (free on MXU)
    b_ref:  (1, 128)              packed bias (b_dr | b_p | zeros)
    o_ref:  (tb, 128)             packed output slab (unmasked full-lane store)
    """
    f_dr = xd_ref.shape[1]
    acc = jnp.dot(xd_ref[...], w_ref[:f_dr, :],
                  preferred_element_type=jnp.float32)
    acc = acc + jnp.dot(xp_ref[...], w_ref[f_dr:, :],
                        preferred_element_type=jnp.float32)
    acc = acc + b_ref[...]                      # broadcast (1, 128) over rows
    o_ref[...] = jnp.maximum(acc, 0.0).astype(o_ref.dtype)


def pack_params(w_dr, b_dr, w_p, b_p):
    """Pack the two nn.Linear layers into one block-diagonal weight + bias.

    w_dr: (H, F_dr), b_dr: (H,), w_p: (H, F_p), b_p: (H,)   [PyTorch layout]
    Done ONCE at init, so the per-call wrapper adds no extra XLA ops.
    """
    h, f_dr = w_dr.shape
    _, f_p = w_p.shape
    w_pack = jnp.zeros((f_dr + f_p, _OUT_PAD), jnp.float32)
    w_pack = w_pack.at[:f_dr, :h].set(w_dr.T.astype(jnp.float32))
    w_pack = w_pack.at[f_dr:, h:2 * h].set(w_p.T.astype(jnp.float32))
    b_pack = jnp.zeros((1, _OUT_PAD), jnp.float32)
    b_pack = b_pack.at[0, :h].set(b_dr.astype(jnp.float32))
    b_pack = b_pack.at[0, h:2 * h].set(b_p.astype(jnp.float32))
    return {"w_pack": w_pack, "b_pack": b_pack}


def dr_p_embedding(drug_feature, protein_feature, params):
    """Forward pass of Dr_P_Embedding — one fused pallas_call.

    drug_feature:    (B, n_finger_feature)
    protein_feature: (B, n_seq_feature)
    returns (h_dr, h_p), each (B, n_hidden)
    """
    B, f_dr = drug_feature.shape
    f_p = protein_feature.shape[1]

    tile_b = B if B <= _MAX_TILE_B else _MAX_TILE_B
    grid_b = pl.cdiv(B, tile_b)
    vmem = pltpu.MemorySpace.VMEM

    out = pl.pallas_call(
        _fused_embedding_kernel,
        out_shape=jax.ShapeDtypeStruct((B, _OUT_PAD), drug_feature.dtype),
        grid=(grid_b,),
        in_specs=[
            pl.BlockSpec((tile_b, f_dr), lambda i: (i, 0), memory_space=vmem),
            pl.BlockSpec((tile_b, f_p), lambda i: (i, 0), memory_space=vmem),
            pl.BlockSpec((f_dr + f_p, _OUT_PAD), lambda i: (0, 0), memory_space=vmem),
            pl.BlockSpec((1, _OUT_PAD), lambda i: (0, 0), memory_space=vmem),
        ],
        out_specs=pl.BlockSpec((tile_b, _OUT_PAD), lambda i: (i, 0), memory_space=vmem),
        compiler_params=pltpu.CompilerParams(
            dimension_semantics=("parallel",)),
    )(drug_feature, protein_feature, params["w_pack"], params["b_pack"])

    h_dr = out[:, :N_HIDDEN]
    h_p = out[:, N_HIDDEN:2 * N_HIDDEN]
    return h_dr, h_p


if __name__ == "__main__":
    key = jax.random.PRNGKey(0)
    k_in1, k_in2, k1, k2, k3, k4 = jax.random.split(key, 6)

    drug_feature = jax.random.normal(k_in1, (BATCH, N_FINGER_FEATURE), jnp.float32)
    protein_feature = jax.random.normal(k_in2, (BATCH, N_SEQ_FEATURE), jnp.float32)

    # PyTorch nn.Linear layout: weight (out, in), bias (out,)
    w_dr = jax.random.normal(k1, (N_HIDDEN, N_FINGER_FEATURE), jnp.float32) * 0.05
    b_dr = jax.random.normal(k2, (N_HIDDEN,), jnp.float32) * 0.05
    w_p = jax.random.normal(k3, (N_HIDDEN, N_SEQ_FEATURE), jnp.float32) * 0.05
    b_p = jax.random.normal(k4, (N_HIDDEN,), jnp.float32) * 0.05

    params = pack_params(w_dr, b_dr, w_p, b_p)

    h_dr, h_p = jax.jit(dr_p_embedding)(drug_feature, protein_feature, params)
    jax.block_until_ready((h_dr, h_p))

    # reference check against plain JAX (same math as the PyTorch module)
    ref_dr = jnp.maximum(drug_feature @ w_dr.T + b_dr, 0.0)
    ref_p = jnp.maximum(protein_feature @ w_p.T + b_p, 0.0)
    assert h_dr.shape == (BATCH, N_HIDDEN) and h_p.shape == (BATCH, N_HIDDEN)
    assert jnp.allclose(h_dr, ref_dr, atol=1e-5)
    assert jnp.allclose(h_p, ref_p, atol=1e-5)

    print("KERNEL_OK")
</pallas_src>

<mosaic_0001>
module attributes {stable_mosaic.version = 11 : i64} {
  func.func @_fused_embedding_kernel(%arg0: i32, %arg1: memref<2x64xf32, #tpu.memory_space<vmem>>, %arg2: memref<2x128xf32, #tpu.memory_space<vmem>>, %arg3: memref<192x128xf32, #tpu.memory_space<vmem>>, %arg4: memref<1x128xf32, #tpu.memory_space<vmem>>, %arg5: memref<2x128xf32, #tpu.memory_space<vmem>>) attributes {dimension_semantics = [#tpu.dimension_semantics<parallel>], iteration_bounds = array<i64: 1>, scalar_prefetch = 0 : i64, scratch_operands = 0 : i64, tpu.core_type = #tpu.core_type<tc>, window_params = [{transform_indices = @transform_0, window_bounds = array<i64: 2, 64>}, {transform_indices = @transform_1, window_bounds = array<i64: 2, 128>}, {pipeline_mode = #tpu.pipeline_mode<synchronous>, transform_indices = @transform_2, window_bounds = array<i64: 192, 128>}, {pipeline_mode = #tpu.pipeline_mode<synchronous>, transform_indices = @transform_3, window_bounds = array<i64: 1, 128>}, {transform_indices = @transform_4, window_bounds = array<i64: 2, 128>}]} {
    %c0 = arith.constant 0 : index
    %c0_0 = arith.constant 0 : index
    %0 = vector.load %arg1[%c0, %c0_0] : memref<2x64xf32, #tpu.memory_space<vmem>>, vector<2x64xf32>
    %c0_1 = arith.constant 0 : index
    %c0_2 = arith.constant 0 : index
    %1 = vector.load %arg3[%c0_1, %c0_2] : memref<192x128xf32, #tpu.memory_space<vmem>>, vector<64x128xf32>
    %cst = arith.constant dense<0.000000e+00> : vector<2x128xf32>
    %2 = tpu.matmul %0, %1, %cst {dimension_numbers = #tpu.dot_dimension_numbers<[1], [0], [0], [1], [0, 0, 1, 1], [], []>} : vector<2x64xf32>, vector<64x128xf32>, vector<2x128xf32> -> vector<2x128xf32>
    %c0_3 = arith.constant 0 : index
    %c0_4 = arith.constant 0 : index
    %3 = vector.load %arg2[%c0_3, %c0_4] : memref<2x128xf32, #tpu.memory_space<vmem>>, vector<2x128xf32>
    %c64 = arith.constant 64 : index
    %c0_5 = arith.constant 0 : index
    %4 = vector.load %arg3[%c64, %c0_5] : memref<192x128xf32, #tpu.memory_space<vmem>>, vector<128x128xf32>
    %cst_6 = arith.constant dense<0.000000e+00> : vector<2x128xf32>
    %5 = tpu.matmul %3, %4, %cst_6 {dimension_numbers = #tpu.dot_dimension_numbers<[1], [0], [0], [1], [0, 0, 1, 1], [], []>} : vector<2x128xf32>, vector<128x128xf32>, vector<2x128xf32> -> vector<2x128xf32>
    %6 = arith.addf %2, %5 : vector<2x128xf32>
    %c0_7 = arith.constant 0 : index
    %c0_8 = arith.constant 0 : index
    %7 = vector.load %arg4[%c0_7, %c0_8] : memref<1x128xf32, #tpu.memory_space<vmem>>, vector<1x128xf32>
    %8 = vector.broadcast %7 : vector<1x128xf32> to vector<2x128xf32>
    %9 = arith.addf %6, %8 : vector<2x128xf32>
    %cst_9 = arith.constant 0.000000e+00 : f32
    %10 = vector.broadcast %cst_9 : f32 to vector<2x128xf32>
    %11 = arith.maximumf %9, %10 : vector<2x128xf32>
    %c0_10 = arith.constant 0 : index
    %c0_11 = arith.constant 0 : index
    %12 = vector.load %arg5[%c0_10, %c0_11] : memref<2x128xf32, #tpu.memory_space<vmem>>, vector<2x128xf32>
    tpu.vector_store %arg5[%c0_10, %c0_11], %11 {strides = array<i32>} : memref<2x128xf32, #tpu.memory_space<vmem>>, vector<2x128xf32>,
    return
  }
  func.func @transform_0(%arg0: i32) -> (i32, i32) {
    %c0_i32 = arith.constant 0 : i32
    %c0_i32_0 = arith.constant 0 : i32
    return %arg0, %c0_i32 : i32, i32
  }
  func.func @transform_1(%arg0: i32) -> (i32, i32) {
    %c0_i32 = arith.constant 0 : i32
    %c0_i32_0 = arith.constant 0 : i32
    return %arg0, %c0_i32 : i32, i32
  }
  func.func @transform_2(%arg0: i32) -> (i32, i32) {
    %c0_i32 = arith.constant 0 : i32
    %c0_i32_0 = arith.constant 0 : i32
    %c0_i32_1 = arith.constant 0 : i32
    return %c0_i32, %c0_i32_0 : i32, i32
  }
  func.func @transform_3(%arg0: i32) -> (i32, i32) {
    %c0_i32 = arith.constant 0 : i32
    %c0_i32_0 = arith.constant 0 : i32
    %c0_i32_1 = arith.constant 0 : i32
    return %c0_i32, %c0_i32_0 : i32, i32
  }
  func.func @transform_4(%arg0: i32) -> (i32, i32) {
    %c0_i32 = arith.constant 0 : i32
    %c0_i32_0 = arith.constant 0 : i32
    return %arg0, %c0_i32 : i32, i32
  }
}

</mosaic_0001>

<bundles_post_ra>
// kernel: dr_p_embedding.1
= control target key start
LH: loop header
LB: loop body
LE: loop exit
PB: predicated region body
PF: predicated region fallthrough
CT: control target
= control target key end

     0   :  { %9 = vsyncpa [#allocation3], 0  ;;  %s486_s0 = inlined_call_operand.hbm [shape: f32[2,64], index: 0, kind: input, shape index: {}]   ;;  %s487_s1 = inlined_call_operand.vmem [shape: f32[2,128], index: 1, kind: input, shape index: {}]   ;;  %s488_s2 = inlined_call_operand.hbm [shape: f32[192,128], index: 2, kind: input, shape index: {}]   ;;  %s489_s3 = inlined_call_operand.vmem [shape: f32[1,128], index: 3, kind: input, shape index: {}]   ;;  %s490_s4 = inlined_call_operand.vmem [shape: f32[2,128], index: 4, kind: output, shape index: {}]  }
   0x1   :  { %10 = vsyncpa [#allocation5], 0  ;;  %s402_s15 = smov [#allocation2]   ;;  %s403_s17 = smov [#allocation4]  }
   0x2   :  { %s17_s16 = sshll.u32 %s402_s15, 4  ;;  %s28_s18 = sshll.u32 %s403_s17, 4  ;;  %s18_s16 = int_to_ptr.vmem [resolvable:$true] %s17_s16  ;;  %s434_s18 = int_to_ptr.vmem [resolvable:$true] %s28_s18 }
   0x3   :  { %s354_s21 = scalar_lea.hbm %s486_s0, 32 }
   0x4   :  { %p355_p0 = scmp.ne.s32.totalorder %s486_s0, %s354_s21  ;;  %p358_p1 = scmp.lt.u32.totalorder %s354_s21, %s486_s0 }
   0x6   :  { %p360_p2 = pnand %p358_p1, %p355_p0 }
   0x8   :  { %363 = shalt.err (!%p360_p2)
}
   0x9   :  { %s364_s26 = scalar_lea.vmem %s18_s16, 32  ;;  %p369_p4 = scmp.lt.s32.totalorder %s18_s16, %s18_s16 }
   0xa   :  { %p365_p3 = scmp.ne.s32.totalorder %s18_s16, %s364_s26  ;;  %p370_p5 = scmp.lt.s32.totalorder %s364_s26, %s364_s26 }
   0xc   :  { %p371_p6 = por %p370_p5, %p369_p4 }
   0xe   :  { %p372_p7 = pnand %p371_p6, %p365_p3 }
  0x10   :  { %375 = shalt.err (!%p372_p7)
}
  0x11   :  { %20 = dma.hbm_to_vmem [thread:$0]  %s486_s0, 32, %s18_s16, [#allocation3]  }
  0x12   :  { %s376_s5 = scalar_lea.hbm %s488_s2, 3072 }
  0x13   :  { %p377_p8 = scmp.ne.s32.totalorder %s488_s2, %s376_s5  ;;  %p380_p9 = scmp.lt.u32.totalorder %s376_s5, %s488_s2 }
  0x15   :  { %p382_p10 = pnand %p380_p9, %p377_p8 }
  0x17   :  { %385 = shalt.err (!%p382_p10)
}
  0x18   :  { %s386_s10 = scalar_lea.vmem %s434_s18, 3072  ;;  %p391_p12 = scmp.lt.s32.totalorder %s434_s18, %s434_s18 }
  0x19   :  { %p387_p11 = scmp.ne.s32.totalorder %s434_s18, %s386_s10  ;;  %p392_p13 = scmp.lt.s32.totalorder %s386_s10, %s386_s10 }
  0x1b   :  { %p393_p0 = por %p392_p13, %p391_p12 }
  0x1d   :  { %p394_p1 = pnand %p393_p0, %p387_p11 }
  0x1f   :  { %397 = shalt.err (!%p394_p1)
}
  0x20   :  { %s404_s0 = smov 128   ;;  %s405_s11 = smov 8  }
  0x21   :  { %34 = dma.hbm_to_vmem [thread:$0]  %s488_s2, 3072, %s434_s18, [#allocation5], %s404_s0, %s404_s0, %s405_s11  }
  0x22   :  { %398 = dma.done.wait [#allocation3], 32  }
  0x23   :  { %399 = vsyncadd [#allocation3], 4294967264 }
  0x24   :  { %400 = dma.done.wait [#allocation5], 3072  }
  0x25   :  { %401 = vsyncadd [#allocation5], 4294964224  ;;  %v406_v0 = vmov 0.0|0.0   ;;  %vm407_vm0 = vmmov 0   ;;  %v408_v1 = vmov 0.0   ;;  %v53_v2 = vld [vmem:[#allocation4 + $0x40] sm:$0xff] }
  0x26   :  { %311 = vmatprep.subr.bf16.mxu0 %v406_v0  ;;  %335 = vmatprep.subr.bf16.mxu1 %v406_v0  ;;  %v54_v3 = vld [vmem:[#allocation4 + $0x48] sm:$0xff]  ;;  %v55_v4 = vld [vmem:[#allocation4 + $0x50] sm:$0xff]  ;;  %v56_v6 = vld [vmem:[#allocation4 + $0x58] sm:$0xff]  ;;  %vm139_vm1 = vcmask 523264  }
  0x27   :  { %308 = vmatprep.mubr.msk.f32.mxu1 %vm407_vm0, %v408_v1  ;;  %289 = vmatprep.mubr.msk.f32.mxu0 %vm407_vm0, %v408_v1  ;;  %v312_v5 = vpack.c.bf16 %v54_v3, %v53_v2  ;;  %v44_v7 = vld [vmem:[#allocation4] sm:$0xff]  ;;  %v315_v8 = vpack.c.bf16 %v56_v6, %v55_v4  ;;  %v45_v10 = vld [vmem:[#allocation4 + $0x8] sm:$0xff]  ;;  %v46_v13 = vld [vmem:[#allocation4 + $0x10] sm:$0xff] }
  0x28   :  { %v57_v9 = vld [vmem:[#allocation4 + $0x60] sm:$0xff]  ;;  %v58_v11 = vld [vmem:[#allocation4 + $0x68] sm:$0xff]  ;;  %v336_v12 = vpack.c.bf16 %v45_v10, %v44_v7  ;;  %v47_v14 = vld [vmem:[#allocation4 + $0x18] sm:$0xff] }
  0x29   :  { %313 = vmatpush3.bf16.msra.mxu0 %v312_v5  ;;  %v339_v15 = vpack.c.bf16 %v47_v14, %v46_v13  ;;  %v318_v16 = vpack.c.bf16 %v58_v11, %v57_v9  ;;  %v48_v17 = vld [vmem:[#allocation4 + $0x20] sm:$0xff]  ;;  %v49_v18 = vld [vmem:[#allocation4 + $0x28] sm:$0xff]  ;;  %v59_v19 = vld [vmem:[#allocation4 + $0x70] sm:$0xff] }
  0x2a   :  { %314 = vmatprep.subr.bf16.mxu0 %v406_v0  ;;  %337 = vmatpush3.bf16.msra.mxu1 %v336_v12  ;;  %v60_v20 = vld [vmem:[#allocation4 + $0x78] sm:$0xff]  ;;  %v342_v21 = vpack.c.bf16 %v49_v18, %v48_v17  ;;  %v50_v23 = vld [vmem:[#allocation4 + $0x30] sm:$0xff]  ;;  %v61_v25 = vld [vmem:[#allocation4 + $0x80] sm:$0xff] }
  0x2b   :  { %338 = vmatprep.subr.bf16.mxu1 %v406_v0  ;;  %v321_v22 = vpack.c.bf16 %v60_v20, %v59_v19  ;;  %v51_v24 = vld [vmem:[#allocation4 + $0x38] sm:$0xff]  ;;  %v62_v26 = vld [vmem:[#allocation4 + $0x88] sm:$0xff]  ;;  %v63_v29 = vld [vmem:[#allocation4 + $0x90] sm:$0xff] }
  0x2c   :  { %v345_v27 = vpack.c.bf16 %v51_v24, %v50_v23  ;;  %v324_v28 = vpack.c.bf16 %v62_v26, %v61_v25  ;;  %v64_v30 = vld [vmem:[#allocation4 + $0x98] sm:$0xff]  ;;  %v65_v33 = vld [vmem:[#allocation4 + $0xa0] sm:$0xff]  ;;  %v66_v34 = vld [vmem:[#allocation4 + $0xa8] sm:$0xff] }
  0x2d   :  { %316 = vmatpush3.bf16.msra.mxu0 %v315_v8  ;;  %v43_v31 = vld [vmem:[#allocation2] sm:$0x3]  ;;  %v327_v32 = vpack.c.bf16 %v64_v30, %v63_v29  ;;  %v330_v35 = vpack.c.bf16 %v66_v34, %v65_v33  ;;  %v67_v36 = vld [vmem:[#allocation4 + $0xb0] sm:$0xff] }
  0x2e   :  { %317 = vmatprep.subr.bf16.mxu0 %v406_v0  ;;  %340 = vmatpush3.bf16.msra.mxu1 %v339_v15  ;;  %v68_v37 = vld [vmem:[#allocation4 + $0xb8] sm:$0xff] }
  0x2f   :  { %341 = vmatprep.subr.bf16.mxu1 %v406_v0  ;;  %v333_v38 = vpack.c.bf16 %v68_v37, %v67_v36  ;;  %v52_v39 = vld [vmem:[%s487_s1] sm:$0x3] }
  0x30   :  { %v230_v43 = vld [vmem:[%s489_s3] ss:$0 sm:$0xff] }
  0x31   :  { %319 = vmatpush3.bf16.msra.mxu0 %v318_v16 }
  0x32   :  { %320 = vmatprep.subr.bf16.mxu0 %v406_v0  ;;  %343 = vmatpush3.bf16.msra.mxu1 %v342_v21 }
  0x33   :  { %344 = vmatprep.subr.bf16.mxu1 %v406_v0 }
  0x35   :  { %322 = vmatpush3.bf16.msra.mxu0 %v321_v22 }
  0x36   :  { %323 = vmatprep.subr.bf16.mxu0 %v406_v0  ;;  %346 = vmatpush3.bf16.msra.mxu1 %v345_v27 }
  0x39   :  { %325 = vmatpush3.bf16.msra.mxu0 %v324_v28  ;;  %309 = vmatmul.mubr.msk.f32.vlgmr.msra.gmra.mrb[0].mxu1 %vm139_vm1, %v43_v31 }
  0x3a   :  { %326 = vmatprep.subr.bf16.mxu0 %v406_v0 }
  0x3d   :  { %328 = vmatpush3.bf16.msra.mxu0 %v327_v32 }
  0x3e   :  { %329 = vmatprep.subr.bf16.mxu0 %v406_v0 }
  0x41   :  { %331 = vmatpush3.bf16.msra.mxu0 %v330_v35 }
  0x42   :  { %332 = vmatprep.subr.bf16.mxu0 %v406_v0 }
  0x45   :  { %334 = vmatpush3.bf16.msra.mxu0 %v333_v38 }
  0x48   :  { %290 = vmatmul.mubr.f32.vlgmr.msra.gmra.mrb[0].mxu0 %v52_v39 }
 0x10c   :  { %v209_v40 = vpop.f32.mrb[0].mxu1 }
 0x10d   :  { %v310_v41 = vpop.f32.mrb[1].mxu1 }
 0x11b   :  { %v135_v42 = vpop.f32.mrb[0].mxu0 }
 0x11c   :  { %v210_v44 = vadd.f32 %v209_v40, %v135_v42  ;;  %v291_v45 = vpop.f32.mrb[1].mxu0 }
 0x11e   :  { %v220_v46 = vadd.f32 %v230_v43, %v210_v44 }
 0x120   :  { %v221_v47 = vmax.f32 %v220_v46, 0.0 }
 0x122   :  { %222 = vst [vmem:[%s490_s4] sm:$0x3] %v221_v47 }
 0x123   :  { %227 = vsyncpa [#allocation3], 1 }
 0x124   :  { %228 = vsyncpa [#allocation5], 1 }

</bundles_post_ra>
